<compile_context>
chip_gen: v6e
topology: v6e:2x2x1
jax: 0.10.0
libtpu: 0.0.40
codegen_flags: <defaults>
</compile_context>

<pallas_src>
import functools

import jax
import jax.numpy as jnp
from jax.experimental import pallas as pl
from jax.experimental.pallas import tpu as pltpu

_LANES = 128
_EPS_SQ = 1e-24  # (1e-12)^2: F.normalize eps applied to the squared norm.


def _round_up(x, m):
    return (x + m - 1) // m * m


def _pick_tile_n(n, e, c, g):
    # Per-row VMEM bytes: double-buffered (tile,E)+(tile,C) f32 input tiles plus
    # the (tile, G) f32 distance intermediate.  Budget kept small so the kernel
    # fits comfortably on v7x (64 MiB VMEM) with default scoped limits.
    budget = 8 * 1024 * 1024
    per_row = 4 * (2 * (e + c) + 2 * g)
    t = budget // max(per_row, 1)
    t = max(128, min(1024, (t // 128) * 128))
    return min(t, _round_up(n, 128))


def _col_to_lane_row(col, tile_n):
    """(tile_n, 1) column -> (1, tile_n) lane-dense row via an aligned transpose."""
    wide = jnp.broadcast_to(col, (tile_n, _LANES))   # lane broadcast (cheap)
    return jnp.transpose(wide)[0:1, :]               # tile-aligned XLU transpose


# --------------------------------------------------------------------------- #
# One-shot proxy normalization:  x -> scale * x / max(||x||, 1e-12)
# --------------------------------------------------------------------------- #
def _normalize_kernel(prox_ref, out_ref, *, scale):
    prox = prox_ref[...]
    sumsq = jnp.sum(prox * prox, axis=-1, keepdims=True)
    inv = jax.lax.rsqrt(jnp.maximum(sumsq, _EPS_SQ))      # EUP rsqrt, no divide
    out_ref[...] = prox * (scale * inv)


def _normalize_proxies(all_prox, scale):
    g, e = all_prox.shape
    return pl.pallas_call(
        functools.partial(_normalize_kernel, scale=float(scale)),
        out_shape=jax.ShapeDtypeStruct((g, e), jnp.float32),
        in_specs=[pl.BlockSpec(memory_space=pltpu.MemorySpace.VMEM)],
        out_specs=pl.BlockSpec(memory_space=pltpu.MemorySpace.VMEM),
    )(all_prox.astype(jnp.float32))


# --------------------------------------------------------------------------- #
# Tiled fused main-proxy + sub-proxy vector losses (grid over N)
# --------------------------------------------------------------------------- #
def _vector_losses_kernel(prox_ref, emb_ref, t_ref, main_ref, sub_ref, *,
                          scale, num_classes, num_sub_sets):
    tile_n = emb_ref.shape[0]
    c = num_classes

    # L2-normalize + scale the embedding tile (rsqrt-multiply, no sqrt/divide).
    emb = emb_ref[...]
    sumsq = jnp.sum(emb * emb, axis=-1, keepdims=True)
    inv = jax.lax.rsqrt(jnp.maximum(sumsq, _EPS_SQ))
    emb_bf = (emb * (scale * inv)).astype(jnp.bfloat16)

    # One fused bf16 MXU matmul against all (1 + P) proxy sets; f32 accumulate.
    cross = jnp.dot(emb_bf, prox_ref[...], preferred_element_type=jnp.float32)
    # ||emb_s||^2 == ||prox_s||^2 == scale^2 exactly after normalization.
    d_all = jnp.maximum(2.0 * scale * scale - 2.0 * cross, 0.0)  # (tile_n, (1+P)*C)

    d_main = d_all[:, :c]                       # main proxy set (reduction=None)
    d_sub = d_all[:, c:2 * c]                   # min over the P sub-proxy sets
    for q in range(1, num_sub_sets):
        lo = c + q * c
        d_sub = jnp.minimum(d_sub, d_all[:, lo:lo + c])

    t = t_ref[...]

    def row_loss(d):
        m = jnp.min(d, axis=-1, keepdims=True)          # shift for exp stability
        e = jnp.exp(m - d)                              # exp(-(d - m))
        l1 = jnp.sum(t * e, axis=-1, keepdims=True)
        l2 = jnp.sum(e, axis=-1, keepdims=True) - l1    # == sum((1-T) * exp(-d))
        return jnp.log(l2) - jnp.log(l1)                # == -log(l1 / l2)

    main_ref[...] = _col_to_lane_row(row_loss(d_main), tile_n)
    sub_ref[...] = _col_to_lane_row(row_loss(d_sub), tile_n)


def _fused_vector_losses(prox_t_bf, emb_pad, t_pad, scale, num_classes,
                         num_sub_sets, tile_n):
    n_pad, e = emb_pad.shape
    g = prox_t_bf.shape[1]
    kernel = functools.partial(
        _vector_losses_kernel, scale=float(scale),
        num_classes=int(num_classes), num_sub_sets=int(num_sub_sets))
    return pl.pallas_call(
        kernel,
        out_shape=(jax.ShapeDtypeStruct((1, n_pad), jnp.float32),
                   jax.ShapeDtypeStruct((1, n_pad), jnp.float32)),
        grid=(n_pad // tile_n,),
        in_specs=[
            pl.BlockSpec((e, g), lambda i: (0, 0)),                 # proxies, resident
            pl.BlockSpec((tile_n, e), lambda i: (i, 0)),            # embedding tile
            pl.BlockSpec((tile_n, num_classes), lambda i: (i, 0)),  # one-hot tile
        ],
        out_specs=(
            pl.BlockSpec((1, tile_n), lambda i: (0, i)),            # lane-dense losses
            pl.BlockSpec((1, tile_n), lambda i: (0, i)),
        ),
        compiler_params=pltpu.CompilerParams(dimension_semantics=("parallel",)),
    )(prox_t_bf, emb_pad, t_pad)


# --------------------------------------------------------------------------- #
# Proxy-proxy loss: all P sub-proxy sets in a single call, T = identity
# --------------------------------------------------------------------------- #
def _proxy_proxy_kernel(main_ref, sub_t_ref, out_ref, *, scale, num_classes,
                        num_sub_sets):
    c = num_classes
    cross = jnp.dot(main_ref[...], sub_t_ref[...],
                    preferred_element_type=jnp.float32)              # (C, P*C)
    d_all = jnp.maximum(2.0 * scale * scale - 2.0 * cross, 0.0)

    rows = jax.lax.broadcasted_iota(jnp.int32, (c, c), 0)
    cols = jax.lax.broadcasted_iota(jnp.int32, (c, c), 1)
    eye = (rows == cols).astype(jnp.float32)                         # T = identity

    acc = jnp.zeros((1, 1), jnp.float32)
    for q in range(num_sub_sets):
        d = d_all[:, q * c:(q + 1) * c]
        m = jnp.min(d, axis=-1, keepdims=True)
        e = jnp.exp(m - d)
        l1 = jnp.sum(eye * e, axis=-1, keepdims=True)
        l2 = jnp.sum(e, axis=-1, keepdims=True) - l1
        acc = acc + jnp.sum(jnp.log(l2) - jnp.log(l1), keepdims=True)
    out_ref[...] = acc * (1.0 / (num_sub_sets * c))


def _proxy_proxy_loss(main_s, sub_t, scale, num_classes, num_sub_sets):
    out = pl.pallas_call(
        functools.partial(_proxy_proxy_kernel, scale=float(scale),
                          num_classes=int(num_classes),
                          num_sub_sets=int(num_sub_sets)),
        out_shape=jax.ShapeDtypeStruct((1, 1), jnp.float32),
        in_specs=[pl.BlockSpec(memory_space=pltpu.MemorySpace.VMEM),
                  pl.BlockSpec(memory_space=pltpu.MemorySpace.VMEM)],
        out_specs=pl.BlockSpec(memory_space=pltpu.MemorySpace.VMEM),
    )(main_s, sub_t)
    return out[0, 0]


# --------------------------------------------------------------------------- #
# Full forward pass
# --------------------------------------------------------------------------- #
def hierarchical_proxy_loss(embeddings, labels, main_proxy, sub_proxy,
                            *, scale=3.0, w1=1.0, w2=1.0):
    n, e = embeddings.shape
    c = main_proxy.shape[1]
    p = sub_proxy.shape[0]
    g = (1 + p) * c

    # binarize_and_smooth_labels(smoothing_const=0) == plain one-hot (glue).
    t_onehot = jax.nn.one_hot(labels, c, dtype=jnp.float32)

    # Normalize + scale all proxy sets once (main set first, then the P sub sets).
    all_prox = jnp.concatenate(
        [main_proxy.reshape(c, e), sub_proxy.reshape(p * c, e)], axis=0)
    prox_f32 = _normalize_proxies(all_prox, scale)       # (G, E) f32
    prox_t_bf = prox_f32.astype(jnp.bfloat16).T          # (E, G) bf16 for the MXU

    # Tiled fused main + sub proxy-vector losses over N (padded, then masked).
    tile_n = _pick_tile_n(n, e, c, g)
    n_pad = _round_up(n, tile_n)
    emb_pad = jnp.pad(embeddings.astype(jnp.float32), ((0, n_pad - n), (0, 0)))
    t_pad = jnp.pad(t_onehot, ((0, n_pad - n), (0, 0)))
    main_rows, sub_rows = _fused_vector_losses(
        prox_t_bf, emb_pad, t_pad, scale, c, p, tile_n)

    mask = jnp.arange(n_pad) < n
    main_loss = jnp.sum(jnp.where(mask, main_rows[0], 0.0)) / n
    sub_loss = jnp.sum(jnp.where(mask, sub_rows[0], 0.0)) / n

    # Proxy-proxy loss (main proxies vs each sub-proxy set, T = identity).
    pp_loss = _proxy_proxy_loss(prox_f32[:c], prox_f32[c:].T, scale, c, p)

    # TODO(synk): indices_tuple is accepted by the reference forward() but unused.
    return main_loss + w1 * sub_loss + w2 * pp_loss


if __name__ == "__main__":
    num_classes = 8
    embedding_size = 32
    proxy_per_class = 5
    batch = 8
    scale = 3.0
    w1, w2 = 1.0, 1.0

    key = jax.random.PRNGKey(0)
    k_emb, k_lab, k_main, k_sub = jax.random.split(key, 4)

    embeddings = jax.random.normal(k_emb, (batch, embedding_size), dtype=jnp.float32)
    labels = jax.random.randint(k_lab, (batch,), 0, num_classes, dtype=jnp.int32)

    # Deterministic parameter init mirroring torch.randn(...) / 8.
    main_proxy = jax.random.normal(
        k_main, (1, num_classes, embedding_size), dtype=jnp.float32) / 8.0
    sub_proxy = jax.random.normal(
        k_sub, (proxy_per_class, num_classes, embedding_size), dtype=jnp.float32) / 8.0

    loss = hierarchical_proxy_loss(
        embeddings, labels, main_proxy, sub_proxy, scale=scale, w1=w1, w2=w2)
    loss = jax.block_until_ready(loss)

    assert jnp.isfinite(loss), "loss is not finite"
    print("KERNEL_OK")
</pallas_src>

<mosaic_0001>
module attributes {stable_mosaic.version = 11 : i64} {
  func.func @_normalize_kernel(%arg0: memref<48x32xf32, #tpu.memory_space<vmem>>, %arg1: memref<48x32xf32, #tpu.memory_space<vmem>>) attributes {dimension_semantics = [], scalar_prefetch = 0 : i64, scratch_operands = 0 : i64, tpu.core_type = #tpu.core_type<tc>} {
    %c0 = arith.constant 0 : index
    %c0_0 = arith.constant 0 : index
    %0 = vector.load %arg0[%c0, %c0_0] : memref<48x32xf32, #tpu.memory_space<vmem>>, vector<48x32xf32>
    %1 = arith.mulf %0, %0 : vector<48x32xf32>
    %cst = arith.constant dense<0.000000e+00> : vector<48xf32>
    %2 = vector.multi_reduction <add>, %1, %cst [1] : vector<48x32xf32> to vector<48xf32>
    %3 = vector.shape_cast %2 : vector<48xf32> to vector<48x1xf32>
    %cst_1 = arith.constant 1.000000e-24 : f32
    %4 = vector.broadcast %cst_1 : f32 to vector<48x1xf32>
    %5 = arith.maximumf %3, %4 : vector<48x1xf32>
    %6 = math.rsqrt %5 : vector<48x1xf32>
    %cst_2 = arith.constant 3.000000e+00 : f32
    %7 = vector.broadcast %cst_2 : f32 to vector<48x1xf32>
    %8 = arith.mulf %7, %6 : vector<48x1xf32>
    %9 = vector.broadcast %8 : vector<48x1xf32> to vector<48x32xf32>
    %10 = arith.mulf %0, %9 : vector<48x32xf32>
    %c0_3 = arith.constant 0 : index
    %c0_4 = arith.constant 0 : index
    %11 = vector.load %arg1[%c0_3, %c0_4] : memref<48x32xf32, #tpu.memory_space<vmem>>, vector<48x32xf32>
    tpu.vector_store %arg1[%c0_3, %c0_4], %10 {strides = array<i32>} : memref<48x32xf32, #tpu.memory_space<vmem>>, vector<48x32xf32>,
    return
  }
}

</mosaic_0001>

<bundles_post_ra>
// kernel: tpu_custom_call.1
= control target key start
LH: loop header
LB: loop body
LE: loop exit
PB: predicated region body
PF: predicated region fallthrough
CT: control target
= control target key end

     0   :  { %vm20_vm0 = vcmask 261120   ;;  %s143_s0 = inlined_call_operand.vmem [shape: f32[48,32], index: 0, kind: input, shape index: {}]   ;;  %s144_s1 = inlined_call_operand.vmem [shape: f32[48,32], index: 1, kind: output, shape index: {}]  }
   0x1   :  { %v10_v0 = vld [vmem:[%s143_s0 + $0x10] sm:$0xff]  ;;  %v8_v1 = vld [vmem:[%s143_s0] sm:$0xff]  ;;  %v11_v2 = vld [vmem:[%s143_s0 + $0x18] sm:$0xff] }
   0x2   :  { %v16_v3 = vmul.f32 %v10_v0, %v10_v0  ;;  %v14_v4 = vmul.f32 %v8_v1, %v8_v1  ;;  %v17_v5 = vmul.f32 %v11_v2, %v11_v2  ;;  %v9_v6 = vld [vmem:[%s143_s0 + $0x8] sm:$0xff]  ;;  %v12_v9 = vld [vmem:[%s143_s0 + $0x20] sm:$0xff] }
   0x3   :  { %v15_v7 = vmul.f32 %v9_v6, %v9_v6  ;;  %v13_v8 = vld [vmem:[%s143_s0 + $0x28] sm:$0xff]  ;;  %v18_v15 = vmul.f32 %v12_v9, %v12_v9 }
   0x4   :  { %v27_v10 = vsel %vm20_vm0, %v16_v3, 0.0  ;;  %v21_v11 = vsel %vm20_vm0, %v14_v4, 0.0  ;;  %v30_v12 = vsel %vm20_vm0, %v17_v5, 0.0  ;;  %v19_v14 = vmul.f32 %v13_v8, %v13_v8 }
   0x5   :  { %28 = vadd.xlane.f32.xlu1 %v27_v10  ;;  %22 = vadd.xlane.f32.xlu0 %v21_v11  ;;  %v24_v13 = vsel %vm20_vm0, %v15_v7, 0.0  ;;  %v33_v17 = vsel %vm20_vm0, %v18_v15, 0.0 }
   0x6   :  { %v36_v16 = vsel %vm20_vm0, %v19_v14, 0.0 }
   0x9   :  { %31 = vadd.xlane.f32.xlu1 %v30_v12  ;;  %25 = vadd.xlane.f32.xlu0 %v24_v13 }
   0xd   :  { %37 = vadd.xlane.f32.xlu1 %v36_v16  ;;  %34 = vadd.xlane.f32.xlu0 %v33_v17 }
  0x8e   :  { %v29_v18 = vpop.xlane.xlu1 %28  ;;  %v23_v19 = vpop.xlane.xlu0 %22 }
  0x8f   :  { %v41_v20 = vmax.f32 %v29_v18, 1e-24  ;;  %v39_v21 = vmax.f32 %v23_v19, 1e-24 }
  0x91   :  { %73 = vrsqrt.f32 %v41_v20 }
  0x92   :  { %75 = vrsqrt.f32 %v39_v21  ;;  %v32_v22 = vpop.xlane.xlu1 %31  ;;  %v26_v23 = vpop.xlane.xlu0 %25 }
  0x93   :  { %v42_v24 = vmax.f32 %v32_v22, 1e-24  ;;  %v40_v25 = vmax.f32 %v26_v23, 1e-24 }
  0x95   :  { %77 = vrsqrt.f32 %v42_v24 }
  0x96   :  { %79 = vrsqrt.f32 %v40_v25  ;;  %v38_v26 = vpop.xlane.xlu1 %37  ;;  %v35_v27 = vpop.xlane.xlu0 %34 }
  0x97   :  { %v44_v28 = vmax.f32 %v38_v26, 1e-24  ;;  %v43_v29 = vmax.f32 %v35_v27, 1e-24 }
  0x99   :  { %81 = vrsqrt.f32 %v44_v28 }
  0x9a   :  { %83 = vrsqrt.f32 %v43_v29 }
  0x9e   :  { %v74_v30 = vpop.eup %73 }
  0x9f   :  { %v76_v31 = vpop.eup %75  ;;  %v53_v32 = vmul.f32 3.0, %v74_v30 }
  0xa0   :  { %v51_v33 = vmul.f32 3.0, %v76_v31 }
  0xa1   :  { %v59_v34 = vmul.f32 %v53_v32, %v10_v0 }
  0xa2   :  { %v78_v35 = vpop.eup %77  ;;  %v57_v36 = vmul.f32 %v51_v33, %v8_v1 }
  0xa3   :  { %v80_v37 = vpop.eup %79  ;;  %65 = vst.msk [vmem:[%s144_s1 + $0x10] sm:$0xff] %vm20_vm0, %v59_v34  ;;  %v54_v38 = vmul.f32 3.0, %v78_v35 }
  0xa4   :  { %63 = vst.msk [vmem:[%s144_s1] sm:$0xff] %vm20_vm0, %v57_v36  ;;  %v52_v39 = vmul.f32 3.0, %v80_v37 }
  0xa5   :  { %v60_v40 = vmul.f32 %v54_v38, %v11_v2 }
  0xa6   :  { %v82_v41 = vpop.eup %81  ;;  %v58_v42 = vmul.f32 %v52_v39, %v9_v6 }
  0xa7   :  { %v84_v43 = vpop.eup %83  ;;  %66 = vst.msk [vmem:[%s144_s1 + $0x18] sm:$0xff] %vm20_vm0, %v60_v40  ;;  %v56_v44 = vmul.f32 3.0, %v82_v41 }
  0xa8   :  { %64 = vst.msk [vmem:[%s144_s1 + $0x8] sm:$0xff] %vm20_vm0, %v58_v42  ;;  %v55_v45 = vmul.f32 3.0, %v84_v43 }
  0xa9   :  { %v62_v46 = vmul.f32 %v56_v44, %v13_v8 }
  0xaa   :  { %v61_v47 = vmul.f32 %v55_v45, %v12_v9 }
  0xab   :  { %68 = vst.msk [vmem:[%s144_s1 + $0x28] sm:$0xff] %vm20_vm0, %v62_v46 }
  0xac   :  { %67 = vst.msk [vmem:[%s144_s1 + $0x20] sm:$0xff] %vm20_vm0, %v61_v47 }

</bundles_post_ra>
